<compile_context>
chip_gen: v7x
topology: tpu7x:2x2x1
jax: 0.10.0
libtpu: 0.0.40
codegen_flags: <defaults>
</compile_context>

<pallas_src>
import jax
import jax.numpy as jnp
from jax import lax
from jax.experimental import pallas as pl
from jax.experimental.pallas import tpu as pltpu

BN_EPS = 1e-5


def mlp_kernel(x_ref, w1_ref, b1_ref, w2_ref, b2_ref, w3r_ref, b3_ref, o_ref):
    x = x_ref[...]                                                       # [TB, D]

    # Linear(D, 64) + ReLU  (x/w1 may be bf16; MXU accumulates in f32).
    h1 = jnp.dot(x, w1_ref[...], preferred_element_type=jnp.float32) + b1_ref[...]
    h1 = jnp.maximum(h1, 0.0)                                            # [TB, 64]

    # (BN1 folded into w2/b2)  Linear(64, 8) + ReLU.
    h2 = jnp.dot(h1, w2_ref[...], preferred_element_type=jnp.float32) + b2_ref[...]
    h2 = jnp.maximum(h2, 0.0)                                            # [TB, 8]

    # (BN2 folded into w3/b3)  Linear(8, 1) as an explicit contraction of dim 1 of both
    # operands -> lane-dense [1, TB] result (no batch-major single-lane stores).
    out = lax.dot_general(
        w3r_ref[...], h2,
        dimension_numbers=(((1,), (1,)), ((), ())),
        preferred_element_type=jnp.float32) + b3_ref[...]                # [1, TB]
    o_ref[...] = out.astype(o_ref.dtype)
    # TODO(synk): training-mode Dropout (RNG mask) and batch-stat BatchNorm not implemented
    # (this kernel matches model.eval()).


def _round_up(n, m):
    return ((n + m - 1) // m) * m


def _vmem_budgets():
    """Returns (per-step batch-tile budget bytes, vmem_limit_bytes), generation aware."""
    try:
        vmem = int(getattr(pltpu.get_tpu_info(), "vmem_capacity_bytes", 0) or 0)
    except Exception:
        vmem = 0
    if vmem >= 100 * 1024 * 1024:
        # v5e / v6e: 128 MiB VMEM -> be aggressive.
        return 20 * 1024 * 1024, 64 * 1024 * 1024
    # v7x (64 MiB physical VMEM) or unknown: stay conservative.
    return 12 * 1024 * 1024, 48 * 1024 * 1024


def _choose_tile_b(B, D, budget):
    # Per batch row: double-buffered x (2*D f32) + h1 (64 f32) + h2 (8 f32)
    # + double-buffered (1, tile_b) output row (2 f32).
    per_row = 4 * (2 * D + 64 + 8 + 2)
    cap = max(128, (budget // per_row) // 128 * 128)     # ~22K rows for D=32 @ 12 MiB
    if B <= 512:
        return B              # single step; every block equals the full array dims
    steps = max(2, pl.cdiv(B, cap))
    steps = _round_up(steps, 2)   # even step count keeps both v7x TensorCores balanced
    return min(cap, _round_up(pl.cdiv(B, steps), 128))


def fold_batchnorms(params):
    """Fold the eval-mode BatchNorms into the following Linear layers (host side, one-time)."""
    (w1, b1, g1, bt1, m1, v1,
     w2, b2, g2, bt2, m2, v2,
     w3, b3) = params

    scale1 = g1 / jnp.sqrt(v1 + BN_EPS)                # [1, 64]
    w2f = w2 * scale1.reshape(-1, 1)                   # [64, 8]
    b2f = b2 + (bt1 - m1 * scale1) @ w2                # [1, 8]

    scale2 = g2 / jnp.sqrt(v2 + BN_EPS)                # [1, 8]
    w3f = w3 * scale2.reshape(-1, 1)                   # [8, 1]
    b3f = b3 + (bt2 - m2 * scale2) @ w3                # [1, 1]

    w3r = w3f.T                                        # [1, 8] row form (lane-dense output)
    return w1, b1, w2f, b2f, w3r, b3f


def mlp_forward(x, folded_params, *, tile_b=None, stream_bf16=False):
    """Eval-mode forward. `folded_params` comes from fold_batchnorms (call it once)."""
    B, D = x.shape
    w1, b1, w2f, b2f, w3r, b3f = folded_params

    if stream_bf16:
        # Halve HBM traffic on the dominant x stream; MXU still accumulates in f32.
        x = x.astype(jnp.bfloat16)
        w1 = w1.astype(jnp.bfloat16)

    budget, vmem_limit = _vmem_budgets()
    if tile_b is None:
        tile_b = _choose_tile_b(B, D, budget)
    assert tile_b == B or tile_b % 128 == 0, "multi-step grids need 128-aligned tiles"

    grid = (pl.cdiv(B, tile_b),)

    def resident(arr):
        # Full-array block, DMA'd once and resident across the batch grid.
        return pl.BlockSpec(arr.shape, lambda i: (0, 0))

    in_specs = [
        # x tile: batch rows on sublanes, no host-side pad. When B % tile_b != 0 the last
        # block's trailing rows are stale/uninitialized VMEM; rows are independent through
        # every matmul, so that garbage only influences output lanes >= B, whose stores are
        # masked by Pallas and never returned to the caller.
        pl.BlockSpec((tile_b, D), lambda i: (i, 0)),
        resident(w1), resident(b1),
        resident(w2f), resident(b2f),
        resident(w3r), resident(b3f),
    ]
    # Lane-dense output: one row of length B, tiled along lanes.
    out_spec = pl.BlockSpec((1, tile_b), lambda i: (0, i))

    grid_spec = pltpu.PrefetchScalarGridSpec(
        num_scalar_prefetch=0,
        grid=grid,
        in_specs=in_specs,
        out_specs=out_spec,
    )

    w_bytes = sum(int(a.size) * a.dtype.itemsize for a in (w1, b1, w2f, b2f, w3r, b3f))
    cost = pl.CostEstimate(
        flops=2 * B * (D * 64 + 64 * 8 + 8),
        transcendentals=0,
        bytes_accessed=int(x.size) * x.dtype.itemsize + w_bytes + B * 4,
    )

    out_row = pl.pallas_call(
        mlp_kernel,
        out_shape=jax.ShapeDtypeStruct((1, B), jnp.float32),
        grid_spec=grid_spec,
        compiler_params=pltpu.CompilerParams(
            dimension_semantics=("parallel",),
            vmem_limit_bytes=vmem_limit,
        ),
        cost_estimate=cost,
    )(x, w1, b1, w2f, b2f, w3r, b3f)

    return out_row.reshape(B, 1)


def init_params(key, input_dim):
    """Deterministic init matching the module's parameter shapes.

    Linear: uniform(-1/sqrt(fan_in), 1/sqrt(fan_in)) like PyTorch defaults; weights stored [in, out].
    BatchNorm: gamma=1, beta=0, running_mean=0, running_var=1 (PyTorch defaults).
    """
    k1, k2, k3, k4, k5, k6 = jax.random.split(key, 6)

    def lin(kw, kb, fan_in, fan_out):
        bound = 1.0 / jnp.sqrt(fan_in)
        w = jax.random.uniform(kw, (fan_in, fan_out), jnp.float32, -bound, bound)
        b = jax.random.uniform(kb, (1, fan_out), jnp.float32, -bound, bound)
        return w, b

    w1, b1 = lin(k1, k2, input_dim, 64)
    w2, b2 = lin(k3, k4, 64, 8)
    w3, b3 = lin(k5, k6, 8, 1)

    g1 = jnp.ones((1, 64), jnp.float32)
    bt1 = jnp.zeros((1, 64), jnp.float32)
    m1 = jnp.zeros((1, 64), jnp.float32)
    v1 = jnp.ones((1, 64), jnp.float32)

    g2 = jnp.ones((1, 8), jnp.float32)
    bt2 = jnp.zeros((1, 8), jnp.float32)
    m2 = jnp.zeros((1, 8), jnp.float32)
    v2 = jnp.ones((1, 8), jnp.float32)

    return (w1, b1, g1, bt1, m1, v1,
            w2, b2, g2, bt2, m2, v2,
            w3, b3)


def mlp_reference(x, params):
    """Pure-JAX reference (un-folded), eval-mode semantics."""
    (w1, b1, g1, bt1, m1, v1,
     w2, b2, g2, bt2, m2, v2,
     w3, b3) = params
    h = jnp.maximum(x @ w1 + b1, 0.0)
    h = (h - m1) * (g1 / jnp.sqrt(v1 + BN_EPS)) + bt1
    h = jnp.maximum(h @ w2 + b2, 0.0)
    h = (h - m2) * (g2 / jnp.sqrt(v2 + BN_EPS)) + bt2
    return h @ w3 + b3


if __name__ == "__main__":
    key = jax.random.PRNGKey(0)
    kx, kp = jax.random.split(key)

    input_dim = 32
    params = init_params(kp, input_dim)
    folded = fold_batchnorms(params)   # one-time host-side fold (not re-run per forward)

    fwd = jax.jit(mlp_forward, static_argnames=("tile_b", "stream_bf16"))

    # Small batch: single full-batch block.
    B = 8
    x = jax.random.normal(kx, (B, input_dim), jnp.float32)
    out = jax.block_until_ready(fwd(x, folded))
    ref = mlp_reference(x, params)
    assert out.shape == (B, 1)
    assert jnp.allclose(out, ref, atol=1e-4, rtol=1e-4), (out, ref)

    # Large ragged batch: multi-step grid, 128-aligned tiles, partial last block, no host pad.
    B2 = 1000
    x2 = jax.random.normal(kx, (B2, input_dim), jnp.float32)
    out2 = jax.block_until_ready(fwd(x2, folded))
    ref2 = mlp_reference(x2, params)
    assert out2.shape == (B2, 1)
    assert jnp.allclose(out2, ref2, atol=1e-4, rtol=1e-4)

    # Optional bf16-streaming path (halves HBM traffic on x); looser tolerance for the cast.
    out3 = jax.block_until_ready(fwd(x2, folded, stream_bf16=True))
    assert out3.shape == (B2, 1)
    assert jnp.allclose(out3, ref2, atol=5e-2, rtol=5e-2)

    print("KERNEL_OK")
</pallas_src>

<mosaic_0001>
module attributes {stable_mosaic.version = 11 : i64} {
  func.func @mlp_kernel(%arg0: i32, %arg1: memref<8x32xf32, #tpu.memory_space<vmem>>, %arg2: memref<32x64xf32, #tpu.memory_space<vmem>>, %arg3: memref<1x64xf32, #tpu.memory_space<vmem>>, %arg4: memref<64x8xf32, #tpu.memory_space<vmem>>, %arg5: memref<1x8xf32, #tpu.memory_space<vmem>>, %arg6: memref<1x8xf32, #tpu.memory_space<vmem>>, %arg7: memref<1x1xf32, #tpu.memory_space<vmem>>, %arg8: memref<1x8xf32, #tpu.memory_space<vmem>>) attributes {dimension_semantics = [#tpu.dimension_semantics<parallel>], iteration_bounds = array<i64: 1>, scalar_prefetch = 0 : i64, scratch_operands = 0 : i64, tpu.core_type = #tpu.core_type<tc>, window_params = [{transform_indices = @transform_0, window_bounds = array<i64: 8, 32>}, {pipeline_mode = #tpu.pipeline_mode<synchronous>, transform_indices = @transform_1, window_bounds = array<i64: 32, 64>}, {pipeline_mode = #tpu.pipeline_mode<synchronous>, transform_indices = @transform_2, window_bounds = array<i64: 1, 64>}, {pipeline_mode = #tpu.pipeline_mode<synchronous>, transform_indices = @transform_3, window_bounds = array<i64: 64, 8>}, {pipeline_mode = #tpu.pipeline_mode<synchronous>, transform_indices = @transform_4, window_bounds = array<i64: 1, 8>}, {pipeline_mode = #tpu.pipeline_mode<synchronous>, transform_indices = @transform_5, window_bounds = array<i64: 1, 8>}, {pipeline_mode = #tpu.pipeline_mode<synchronous>, transform_indices = @transform_6, window_bounds = array<i64: 1, 1>}, {transform_indices = @transform_7, window_bounds = array<i64: 1, 8>}]} {
    %c0 = arith.constant 0 : index
    %c0_0 = arith.constant 0 : index
    %0 = vector.load %arg1[%c0, %c0_0] : memref<8x32xf32, #tpu.memory_space<vmem>>, vector<8x32xf32>
    %c0_1 = arith.constant 0 : index
    %c0_2 = arith.constant 0 : index
    %1 = vector.load %arg2[%c0_1, %c0_2] : memref<32x64xf32, #tpu.memory_space<vmem>>, vector<32x64xf32>
    %cst = arith.constant dense<0.000000e+00> : vector<8x64xf32>
    %2 = tpu.matmul %0, %1, %cst {dimension_numbers = #tpu.dot_dimension_numbers<[1], [0], [0], [1], [0, 0, 1, 1], [], []>} : vector<8x32xf32>, vector<32x64xf32>, vector<8x64xf32> -> vector<8x64xf32>
    %c0_3 = arith.constant 0 : index
    %c0_4 = arith.constant 0 : index
    %3 = vector.load %arg3[%c0_3, %c0_4] : memref<1x64xf32, #tpu.memory_space<vmem>>, vector<1x64xf32>
    %4 = vector.broadcast %3 : vector<1x64xf32> to vector<8x64xf32>
    %5 = arith.addf %2, %4 : vector<8x64xf32>
    %cst_5 = arith.constant 0.000000e+00 : f32
    %6 = vector.broadcast %cst_5 : f32 to vector<8x64xf32>
    %7 = arith.maximumf %5, %6 : vector<8x64xf32>
    %c0_6 = arith.constant 0 : index
    %c0_7 = arith.constant 0 : index
    %8 = vector.load %arg4[%c0_6, %c0_7] : memref<64x8xf32, #tpu.memory_space<vmem>>, vector<64x8xf32>
    %cst_8 = arith.constant dense<0.000000e+00> : vector<8x8xf32>
    %9 = tpu.matmul %7, %8, %cst_8 {dimension_numbers = #tpu.dot_dimension_numbers<[1], [0], [0], [1], [0, 0, 1, 1], [], []>} : vector<8x64xf32>, vector<64x8xf32>, vector<8x8xf32> -> vector<8x8xf32>
    %c0_9 = arith.constant 0 : index
    %c0_10 = arith.constant 0 : index
    %10 = vector.load %arg5[%c0_9, %c0_10] : memref<1x8xf32, #tpu.memory_space<vmem>>, vector<1x8xf32>
    %11 = vector.broadcast %10 : vector<1x8xf32> to vector<8x8xf32>
    %12 = arith.addf %9, %11 : vector<8x8xf32>
    %cst_11 = arith.constant 0.000000e+00 : f32
    %13 = vector.broadcast %cst_11 : f32 to vector<8x8xf32>
    %14 = arith.maximumf %12, %13 : vector<8x8xf32>
    %c0_12 = arith.constant 0 : index
    %c0_13 = arith.constant 0 : index
    %15 = vector.load %arg6[%c0_12, %c0_13] : memref<1x8xf32, #tpu.memory_space<vmem>>, vector<1x8xf32>
    %cst_14 = arith.constant dense<0.000000e+00> : vector<1x8xf32>
    %16 = tpu.matmul %15, %14, %cst_14 {dimension_numbers = #tpu.dot_dimension_numbers<[1], [1], [0], [0], [0, 0, 1, 0], [], []>} : vector<1x8xf32>, vector<8x8xf32>, vector<1x8xf32> -> vector<1x8xf32>
    %c0_15 = arith.constant 0 : index
    %c0_16 = arith.constant 0 : index
    %17 = vector.load %arg7[%c0_15, %c0_16] : memref<1x1xf32, #tpu.memory_space<vmem>>, vector<1x1xf32>
    %18 = vector.broadcast %17 : vector<1x1xf32> to vector<1x8xf32>
    %19 = arith.addf %16, %18 : vector<1x8xf32>
    %c0_17 = arith.constant 0 : index
    %c0_18 = arith.constant 0 : index
    %20 = vector.load %arg8[%c0_17, %c0_18] : memref<1x8xf32, #tpu.memory_space<vmem>>, vector<1x8xf32>
    tpu.vector_store %arg8[%c0_17, %c0_18], %19 {strides = array<i32>} : memref<1x8xf32, #tpu.memory_space<vmem>>, vector<1x8xf32>,
    return
  }
  func.func @transform_0(%arg0: i32) -> (i32, i32) {
    %c0_i32 = arith.constant 0 : i32
    %c0_i32_0 = arith.constant 0 : i32
    return %arg0, %c0_i32 : i32, i32
  }
  func.func @transform_1(%arg0: i32) -> (i32, i32) {
    %c0_i32 = arith.constant 0 : i32
    %c0_i32_0 = arith.constant 0 : i32
    %c0_i32_1 = arith.constant 0 : i32
    return %c0_i32, %c0_i32_0 : i32, i32
  }
  func.func @transform_2(%arg0: i32) -> (i32, i32) {
    %c0_i32 = arith.constant 0 : i32
    %c0_i32_0 = arith.constant 0 : i32
    %c0_i32_1 = arith.constant 0 : i32
    return %c0_i32, %c0_i32_0 : i32, i32
  }
  func.func @transform_3(%arg0: i32) -> (i32, i32) {
    %c0_i32 = arith.constant 0 : i32
    %c0_i32_0 = arith.constant 0 : i32
    %c0_i32_1 = arith.constant 0 : i32
    return %c0_i32, %c0_i32_0 : i32, i32
  }
  func.func @transform_4(%arg0: i32) -> (i32, i32) {
    %c0_i32 = arith.constant 0 : i32
    %c0_i32_0 = arith.constant 0 : i32
    %c0_i32_1 = arith.constant 0 : i32
    return %c0_i32, %c0_i32_0 : i32, i32
  }
  func.func @transform_5(%arg0: i32) -> (i32, i32) {
    %c0_i32 = arith.constant 0 : i32
    %c0_i32_0 = arith.constant 0 : i32
    %c0_i32_1 = arith.constant 0 : i32
    return %c0_i32, %c0_i32_0 : i32, i32
  }
  func.func @transform_6(%arg0: i32) -> (i32, i32) {
    %c0_i32 = arith.constant 0 : i32
    %c0_i32_0 = arith.constant 0 : i32
    %c0_i32_1 = arith.constant 0 : i32
    return %c0_i32, %c0_i32_0 : i32, i32
  }
  func.func @transform_7(%arg0: i32) -> (i32, i32) {
    %c0_i32 = arith.constant 0 : i32
    %c0_i32_0 = arith.constant 0 : i32
    return %c0_i32, %arg0 : i32, i32
  }
}

</mosaic_0001>

<bundles_post_ra>
// kernel: mlp_forward.1
= control target key start
LH: loop header
LB: loop body
LE: loop exit
PB: predicated region body
PF: predicated region fallthrough
CT: control target
= control target key end

     0   :  { %s526_s0 = inlined_call_operand.vmem [shape: f32[8,32], index: 0, kind: input, shape index: {}]   ;;  %s527_s1 = inlined_call_operand.vmem [shape: f32[32,64], index: 1, kind: input, shape index: {}]   ;;  %s528_s2 = inlined_call_operand.vmem [shape: f32[1,64], index: 2, kind: input, shape index: {}]   ;;  %s529_s3 = inlined_call_operand.vmem [shape: f32[64,8], index: 3, kind: input, shape index: {}]   ;;  %s530_s4 = inlined_call_operand.vmem [shape: f32[1,8], index: 4, kind: input, shape index: {}]   ;;  %s531_s5 = inlined_call_operand.vmem [shape: f32[1,8], index: 5, kind: input, shape index: {}]   ;;  %s532_s6 = inlined_call_operand.<no memory space> [shape: f32[1,1], index: 6, kind: input, shape index: {}]   ;;  %s533_s7 = inlined_call_operand.hbm [shape: f32[1,8], index: 7, kind: output, shape index: {}]  }
   0x1   :  { %v12_v0 = vstv %s532_s6 }
   0x2   :  { %13 = vst [vmem:[#allocation2] sm:$0x1] %v12_v0 }
   0x3   :  { %v30_v1 = vld [vmem:[%s527_s1] sm:$0xff]  ;;  %v31_v2 = vld [vmem:[%s527_s1 + $0x8] sm:$0xff]  ;;  %v32_v3 = vld [vmem:[%s527_s1 + $0x10] sm:$0xff]  ;;  %v415_v4 = vmov 0.0|0.0   ;;  %vm416_vm0 = vmmov 0   ;;  %v417_v7 = vmov 0.0  }
   0x4   :  { %367 = vmatprep.subr.bf16.mxu0 %v415_v4  ;;  %v368_v5 = vpack.c.bf16 %v31_v2, %v30_v1  ;;  %v33_v6 = vld [vmem:[%s527_s1 + $0x18] sm:$0xff]  ;;  %340 = vmatprep.mubr.msk.f32.mxu0 %vm416_vm0, %v417_v7  ;;  %v116_v8 = vld [vmem:[%s529_s3] sm:$0xff]  ;;  %v117_v9 = vld [vmem:[%s529_s3 + $0x8] sm:$0xff] }
   0x5   :  { %373 = vmatprep.subr.bf16.mxu1 %v415_v4  ;;  %v118_v10 = vld [vmem:[%s529_s3 + $0x10] sm:$0xff]  ;;  %v119_v11 = vld [vmem:[%s529_s3 + $0x18] sm:$0xff]  ;;  %359 = vmatprep.mubr.msk.f32.mxu1 %vm416_vm0, %v417_v7  ;;  %v371_v12 = vpack.c.bf16 %v33_v6, %v32_v3  ;;  %v374_v13 = vpack.c.bf16 %v117_v9, %v116_v8 }
   0x6   :  { %369 = vmatpush3.bf16.msra.mxu0 %v368_v5 }
   0x7   :  { %370 = vmatprep.subr.bf16.mxu0 %v415_v4 }
   0x8   :  { %14 = vsyncpa [#allocation4], 0  ;;  %375 = vmatpush3.bf16.msra.mxu1 %v374_v13  ;;  %v377_v14 = vpack.c.bf16 %v119_v11, %v118_v10  ;;  %v120_v15 = vld [vmem:[%s529_s3 + $0x20] sm:$0xff]  ;;  %v121_v16 = vld [vmem:[%s529_s3 + $0x28] sm:$0xff]  ;;  %vm41_vm1 = vcmask 261120   ;;  %vm131_vm2 = vcmask 523264   ;;  %v213_v35 = vlaneseq }
   0x9   :  { %376 = vmatprep.subr.bf16.mxu1 %v415_v4  ;;  %v29_v17 = vld [vmem:[%s526_s0] sm:$0xff]  ;;  %v380_v18 = vpack.c.bf16 %v121_v16, %v120_v15  ;;  %v122_v19 = vld [vmem:[%s529_s3 + $0x30] sm:$0xff]  ;;  %v123_v20 = vld [vmem:[%s529_s3 + $0x38] sm:$0xff]  ;;  %v418_v28 = vmov 0   ;;  %vm217_vm3 = vcmask 64512   ;;  %s419_s30 = smov [#allocation3]  }
   0xa   :  { %372 = vmatpush3.bf16.msra.mxu0 %v371_v12  ;;  %v383_v21 = vpack.c.bf16 %v123_v20, %v122_v19  ;;  %v310_v22 = vld [vmem:[%s528_s2] ss:$0 sm:$0xff]  ;;  %390 = vset.pattern.permute.xlu0 %v418_v28  ;;  %v214_v36 = vshrl.u32 %v213_v35, 7  ;;  %s302_s8 = sshll.u32 %s419_s30, 4  ;;  %vm294_vm4 = vcmask 57344   ;;  %s303_s8 = int_to_ptr.vmem [resolvable:$true] %s302_s8 }
   0xb   :  { %362 = vmatprep.subr.mxu0 %v417_v7  ;;  %v207_v27 = vld [vmem:[#allocation2] sm:$0x1]  ;;  %s395_s9 = scalar_lea.vmem %s303_s8, 32  ;;  %p396_p1 = scmp.lt.s32.totalorder %s303_s8, %s303_s8 }
   0xc   :  { %378 = vmatpush3.bf16.msra.mxu1 %v377_v14  ;;  %210 = vperm.xlu0 %390, %v207_v27   ;;  %v312_v29 = vld [vmem:[%s530_s4] ss:$0 sm:$0xff]  ;;  %v215_v37 = vsub.s32 0, %v214_v36  ;;  %s391_s4 = scalar_lea.vmem %s303_s8, 16 }
   0xd   :  { %341 = vmatmul.mubr.msk.f32.vlgmr.msra.gmra.mrb[0].mxu0 %vm41_vm1, %v29_v17  ;;  %379 = vmatprep.subr.bf16.mxu1 %v415_v4  ;;  %v206_v34 = vld [vmem:[%s531_s5] sm:$0x1]  ;;  %p392_p0 = scmp.ne.s32.totalorder %s303_s8, %s391_s4  ;;  %p397_p2 = scmp.lt.s32.totalorder %s395_s9, %s391_s4 }
   0xe   :  { %364 = vmatprep.mubr.msk.f32.mxu0 %vm416_vm0, %v417_v7 }
   0xf   :  { %p398_p3 = por %p397_p2, %p396_p1 }
  0x10   :  { %381 = vmatpush3.bf16.msra.mxu1 %v380_v18 }
  0x11   :  { %382 = vmatprep.subr.bf16.mxu1 %v415_v4  ;;  %p399_p4 = pnand %p398_p3, %p392_p0 }
  0x14   :  { %384 = vmatpush3.bf16.msra.mxu1 %v383_v21 }
  0x8b   :  { %v211_v38 = vpop.permute.xlu0 %210 }
  0x8c   :  { %v216_v39 = vrot.slane %v211_v38, %v215_v37 }
  0xe0   :  { %v111_v23 = vpop.f32.mrb[0].mxu0 }
  0xe1   :  { %v112_v24 = vadd.f32 %v310_v22, %v111_v23  ;;  %v342_v25 = vpop.f32.mrb[1].mxu0 }
  0xe3   :  { %v115_v26 = vmax.f32 %v112_v24, 0.0 }
  0xe5   :  { %360 = vmatmul.mubr.msk.f32.vlgmr.msra.gmra.mrb[0].mxu1 %vm131_vm2, %v115_v26 }
 0x1b8   :  { %v201_v30 = vpop.f32.mrb[0].mxu1 }
 0x1b9   :  { %v202_v31 = vadd.f32 %v312_v29, %v201_v30  ;;  %v361_v32 = vpop.f32.mrb[1].mxu1 }
 0x1bb   :  { %v205_v33 = vmax.f32 %v202_v31, 0.0 }
 0x1bd   :  { %363 = vmatpush3.xpose.msk.msra.mxu0 %vm217_vm3, %v205_v33 }
 0x1c0   :  { %365 = vmatmul.mubr.msk.f32.vlgmr.msra.gmra.mrb[2].mxu0 %vm217_vm3, %v206_v34 }
 0x293   :  { %v290_v40 = vpop.f32.mrb[2].mxu0 }
 0x294   :  { %v291_v41 = vadd.f32 %v290_v40, %v216_v39  ;;  %v366_v42 = vpop.f32.mrb[3].mxu0 }
 0x296   :  { %295 = vst.msk [vmem:[#allocation3] sm:$0x1] %vm294_vm4, %v291_v41 }
 0x297   :  { %402 = shalt.err (!%p399_p4)
}
 0x298   :  { %s403_s6 = scalar_lea.hbm %s533_s7, 16 }
 0x299   :  { %p404_p5 = scmp.ne.s32.totalorder %s533_s7, %s403_s6  ;;  %p407_p6 = scmp.lt.u32.totalorder %s403_s6, %s533_s7 }
 0x29b   :  { %p409_p7 = pnand %p407_p6, %p404_p5 }
 0x29d   :  { %412 = shalt.err (!%p409_p7)
}
 0x29e   :  { %305 = dma.vmem_to_hbm [thread:$0]  %s303_s8, 16, %s533_s7, [#allocation4]  }
 0x29f   :  { %413 = dma.done.wait [#allocation4], 16  }
 0x2a0   :  { %414 = vsyncadd [#allocation4], 4294967280 }
 0x2a1   :  { %309 = vsyncpa [#allocation4], 1 }

</bundles_post_ra>
